<compile_context>
chip_gen: v5e
topology: v5e:2x2
jax: 0.10.0
libtpu: 0.0.40
codegen_flags: <defaults>
</compile_context>

<pallas_src>
import math

import jax
import jax.numpy as jnp
import numpy as np
from jax.experimental import pallas as pl
from jax.experimental.pallas import tpu as pltpu

_HI = jax.lax.Precision.HIGHEST
_VMEM_LIMIT = 32 * 1024 * 1024


# --------------------------- tiling ------------------------------------------

def _choose_tile(p, cin, cc, itemsize):
    """Lane-dense spatial tile sized from a VMEM / bandwidth budget."""
    bytes_per_col = (2 * cin + cc) * itemsize                 # feat in + out + coarse in
    target = max(512, (4 * 1024 * 1024) // bytes_per_col)     # >= ~4 MiB HBM per step
    cap = max(128, (16 * 1024 * 1024) // (2 * bytes_per_col))  # 2x-buffered blocks <= 16 MiB
    tp = max(128, (min(target, cap) // 128) * 128)
    if p <= tp:
        return p, 1                                           # single full-extent tile
    return tp, -(-p // tp)                                    # cdiv


# --------------------------- kernel factories ---------------------------------

def _make_pass1_kernel(p_valid, tp, n_split, n_inner):
    """Accumulate acc = feat @ softmax(coarse)^T (Cin,Cc) and class mass (Cc,1)."""
    needs_mask = (p_valid % tp) != 0

    def kernel(feat_ref, coarse_ref, acc_ref, mass_ref):
        pi = pl.program_id(1)

        @pl.when(pi == 0)
        def _():
            acc_ref[...] = jnp.zeros_like(acc_ref)
            mass_ref[...] = jnp.zeros_like(mass_ref)

        coarse = coarse_ref[0].astype(jnp.float32)            # (Cc, tp)
        feat = feat_ref[0].astype(jnp.float32)                # (Cin, tp)

        if needs_mask:                                        # boundary tile only
            if n_split > 1:
                tile = (pl.program_id(0) % n_split) * n_inner + pi
            else:
                tile = pi
            lane = jax.lax.broadcasted_iota(jnp.int32, (1, tp), 1)
            valid = (lane + tile * tp) < p_valid
            coarse = jnp.where(valid, coarse, 0.0)
            feat = jnp.where(valid, feat, 0.0)

        m = jnp.max(coarse, axis=0, keepdims=True)            # softmax over classes
        e = jnp.exp(coarse - m)
        cp = e / jnp.sum(e, axis=0, keepdims=True)
        if needs_mask:
            cp = jnp.where(valid, cp, 0.0)

        # acc += feat @ cp^T  -> (Cin, Cc), full-f32 MXU contraction
        acc_ref[0] += jax.lax.dot_general(
            feat, cp, (((1,), (1,)), ((), ())),
            preferred_element_type=jnp.float32, precision=_HI)
        mass_ref[0] += jnp.sum(cp, axis=1, keepdims=True)     # (Cc, 1)

    return kernel


def _make_pass2_kernel():
    """out = W_out[:, :Cin] @ feat + (W_out[:, Cin:] @ g2i) @ softmax(coarse) + b."""

    def kernel(feat_ref, coarse_ref, wbg_ref, wa_ref, b_out_ref, out_ref):
        coarse = coarse_ref[0].astype(jnp.float32)            # (Cc, tp)
        m = jnp.max(coarse, axis=0, keepdims=True)
        e = jnp.exp(coarse - m)
        cp = e / jnp.sum(e, axis=0, keepdims=True)

        feat = feat_ref[0].astype(jnp.float32)                # (Cin, tp)
        out = (jnp.dot(wa_ref[...], feat,
                       preferred_element_type=jnp.float32, precision=_HI)
               + jnp.dot(wbg_ref[0], cp,
                         preferred_element_type=jnp.float32, precision=_HI)
               + b_out_ref[...])                              # (Cin, tp)
        out_ref[0] = out.astype(out_ref.dtype)

    return kernel


# ------------------------------- wrapper --------------------------------------

def inter_graph_forward(feature, coarse_pred, global_proto, params):
    f32 = jnp.float32
    b, cin, w, h = feature.shape
    cc = coarse_pred.shape[1]
    p = w * h
    itemsize = max(jnp.dtype(feature.dtype).itemsize,
                   jnp.dtype(coarse_pred.dtype).itemsize)

    tp, n_p = _choose_tile(p, cin, cc, itemsize)

    # Split the P axis across two "parallel" programs when batch alone cannot
    # feed both TensorCores (megacore / v7x).
    n_split = 2 if (b == 1 and n_p % 2 == 0) else 1
    n_inner = n_p // n_split

    feat = feature.reshape(b, cin, p)        # no pad: boundary blocks are masked
    coarse = coarse_pred.reshape(b, cc, p)

    if n_split == 1:
        fmap = lambda g, pi: (g, 0, pi)
    else:
        fmap = lambda g, pi: (g // n_split, 0, (g % n_split) * n_inner + pi)

    # ---- pass 1: acc = feat @ softmax^T and per-class pixel mass -------------
    cost_p1 = pl.CostEstimate(
        flops=int(b * p * (2 * cin * cc + 6 * cc)),
        transcendentals=int(b * cc * p),
        bytes_accessed=int(b * (cin + cc) * p * itemsize))

    acc, mass = pl.pallas_call(
        _make_pass1_kernel(p, tp, n_split, n_inner),
        out_shape=(jax.ShapeDtypeStruct((b * n_split, cin, cc), f32),
                   jax.ShapeDtypeStruct((b * n_split, cc, 1), f32)),
        grid_spec=pltpu.PrefetchScalarGridSpec(
            num_scalar_prefetch=0,
            grid=(b * n_split, n_inner),
            in_specs=[
                pl.BlockSpec((1, cin, tp), fmap),             # feature
                pl.BlockSpec((1, cc, tp), fmap),              # coarse
            ],
            out_specs=[
                pl.BlockSpec((1, cin, cc), lambda g, pi: (g, 0, 0)),
                pl.BlockSpec((1, cc, 1), lambda g, pi: (g, 0, 0)),
            ],
        ),
        compiler_params=pltpu.CompilerParams(
            dimension_semantics=("parallel", "arbitrary"),
            vmem_limit_bytes=_VMEM_LIMIT),
        cost_estimate=cost_p1,
    )(feat, coarse)

    # ---- tiny graph math (Cc x Cc / Ci x Cc) in plain JAX ---------------------
    acc = acc.reshape(b, n_split, cin, cc).sum(axis=1)        # (b, Cin, Cc)
    mass = mass.reshape(b, n_split, cc, 1).sum(axis=1)        # (b, Cc, 1)

    w_red = params["w_red"].astype(f32)                       # (Ci, Cin)
    b_red = params["b_red"].astype(f32)                       # (Ci, 1)
    g2i_w = params["g2i"].astype(f32)                         # (Ci, Ci)
    w_out = params["w_out"].astype(f32)                       # (Cin, Cin+Ci)
    b_out = params["b_out"].astype(f32)                       # (Cin, 1)
    gp = global_proto.astype(f32)                             # (b, Ci, Cc)

    mass_t = jnp.swapaxes(mass, 1, 2)                         # (b, 1, Cc)
    image_proto = (jnp.einsum('oi,bic->boc', w_red, acc, precision=_HI)
                   + b_red[None] * mass_t)                    # (b, Ci, Cc)
    image_proto = image_proto / mass_t                        # per-class pixel mass

    adj = jnp.einsum('bic,bid->bcd', gp, image_proto, precision=_HI)
    adj = jnp.maximum(adj, 0.0)
    d_l = jax.lax.rsqrt(jnp.sum(adj, axis=2) + 1e-6)
    d_r = jax.lax.rsqrt(jnp.sum(adj, axis=1) + 1e-6)
    adj = d_l[:, :, None] * adj * d_r[:, None, :]
    g2i = jnp.einsum('bic,bcd->bid', gp, adj, precision=_HI)
    g2i = jnp.einsum('ij,bjd->bid', g2i_w, g2i, precision=_HI)      # (b, Ci, Cc)

    wa = w_out[:, :cin]                                             # (Cin, Cin)
    wbg = jnp.einsum('oi,bic->boc', w_out[:, cin:], g2i, precision=_HI)  # (b, Cin, Cc)

    # ---- pass 2: split output conv, graph message folded through W_out -------
    cost_p2 = pl.CostEstimate(
        flops=int(b * p * (2 * cin * (cin + cc) + 6 * cc)),
        transcendentals=int(b * cc * p),
        bytes_accessed=int(b * (2 * cin + cc) * p * itemsize))

    out = pl.pallas_call(
        _make_pass2_kernel(),
        out_shape=jax.ShapeDtypeStruct((b, cin, p), feature.dtype),
        grid_spec=pltpu.PrefetchScalarGridSpec(
            num_scalar_prefetch=0,
            grid=(b, n_p),
            in_specs=[
                pl.BlockSpec((1, cin, tp), lambda bi, pi: (bi, 0, pi)),  # feature
                pl.BlockSpec((1, cc, tp), lambda bi, pi: (bi, 0, pi)),   # coarse
                pl.BlockSpec((1, cin, cc), lambda bi, pi: (bi, 0, 0)),   # wbg
                pl.BlockSpec((cin, cin), lambda bi, pi: (0, 0)),         # W_out[:, :Cin]
                pl.BlockSpec((cin, 1), lambda bi, pi: (0, 0)),           # b_out
            ],
            out_specs=pl.BlockSpec((1, cin, tp), lambda bi, pi: (bi, 0, pi)),
        ),
        compiler_params=pltpu.CompilerParams(
            dimension_semantics=("parallel", "parallel"),
            vmem_limit_bytes=_VMEM_LIMIT),
        cost_estimate=cost_p2,
    )(feat, coarse, wbg, wa, b_out)

    return out.reshape(b, cin, w, h)


# --------------------------- pure-JAX reference -------------------------------

def inter_graph_reference(feature, coarse_pred, global_proto, params):
    hi = jax.lax.Precision.HIGHEST
    b, cin, w, h = feature.shape
    cc = coarse_pred.shape[1]
    P = w * h
    feat = feature.reshape(b, cin, P).astype(jnp.float32)
    cp = jax.nn.softmax(coarse_pred.reshape(b, cc, P).astype(jnp.float32), axis=1)

    rf = jnp.einsum('oi,bip->bop', params["w_red"], feat, precision=hi) \
        + params["b_red"][None]
    ip = jnp.einsum('bip,bcp->bic', rf, cp, precision=hi)
    ip = ip / jnp.sum(cp, axis=2)[:, None, :]
    adj = jnp.einsum('bic,bid->bcd', global_proto, ip, precision=hi)
    adj = jnp.maximum(adj, 0.0)
    d_l = jax.lax.rsqrt(jnp.sum(adj, axis=2) + 1e-6)
    d_r = jax.lax.rsqrt(jnp.sum(adj, axis=1) + 1e-6)
    adj = d_l[:, :, None] * adj * d_r[:, None, :]
    g2i = jnp.einsum('bic,bcd->bid', global_proto, adj, precision=hi)
    g2i = jnp.einsum('ij,bjd->bid', params["g2i"], g2i, precision=hi)
    nf = jnp.einsum('bic,bcp->bip', g2i, cp, precision=hi)
    cat = jnp.concatenate([feat, nf], axis=1)
    out = jnp.einsum('oc,bcp->bop', params["w_out"], cat, precision=hi) \
        + params["b_out"][None]
    return out.reshape(b, cin, w, h)


# ------------------------------- main ----------------------------------------

if __name__ == "__main__":
    in_channel, inner_channel, n_classes = 4, 8, 4
    b, w, h = 2, 16, 16

    key = jax.random.PRNGKey(0)
    kf, kc, kg, k1, k2, k3, k4, k5 = jax.random.split(key, 8)

    feature = jax.random.normal(kf, (b, in_channel, w, h), jnp.float32)
    coarse_pred = jax.random.normal(kc, (b, n_classes, w, h), jnp.float32)
    global_proto = jax.random.normal(kg, (b, inner_channel, n_classes), jnp.float32)

    params = {
        # reduced_conv: Conv2d(in_channel, inner_channel, 1) -> (Ci, Cin) + (Ci, 1)
        "w_red": 0.1 * jax.random.normal(k1, (inner_channel, in_channel), jnp.float32),
        "b_red": 0.1 * jax.random.normal(k2, (inner_channel, 1), jnp.float32),
        # g2i_conv: Parameter(inner, inner) ~ N(0, sqrt(2/inner))
        "g2i": math.sqrt(2.0 / inner_channel)
               * jax.random.normal(k3, (inner_channel, inner_channel), jnp.float32),
        # out_conv: Conv2d(in_channel + inner_channel, in_channel, 1)
        "w_out": 0.1 * jax.random.normal(
            k4, (in_channel, in_channel + inner_channel), jnp.float32),
        "b_out": 0.1 * jax.random.normal(k5, (in_channel, 1), jnp.float32),
    }

    out = inter_graph_forward(feature, coarse_pred, global_proto, params)
    out = jax.block_until_ready(out)

    ref = inter_graph_reference(feature, coarse_pred, global_proto, params)
    np.testing.assert_allclose(np.asarray(out), np.asarray(ref),
                               rtol=2e-3, atol=2e-3)

    print("KERNEL_OK")
</pallas_src>

<mosaic_0001>
module attributes {stable_mosaic.version = 11 : i64} {
  func.func @kernel(%arg0: i32, %arg1: i32, %arg2: memref<1x4x256xf32, #tpu.memory_space<vmem>>, %arg3: memref<1x4x256xf32, #tpu.memory_space<vmem>>, %arg4: memref<1x4x4xf32, #tpu.memory_space<vmem>>, %arg5: memref<1x4x1xf32, #tpu.memory_space<vmem>>) attributes {dimension_semantics = [#tpu.dimension_semantics<parallel>, #tpu.dimension_semantics<arbitrary>], iteration_bounds = array<i64: 2, 1>, scalar_prefetch = 0 : i64, scratch_operands = 0 : i64, tpu.core_type = #tpu.core_type<tc>, window_params = [{transform_indices = @transform_0, window_bounds = array<i64: 1, 4, 256>}, {transform_indices = @transform_1, window_bounds = array<i64: 1, 4, 256>}, {transform_indices = @transform_2, window_bounds = array<i64: 1, 4, 4>}, {transform_indices = @transform_3, window_bounds = array<i64: 1, 4, 1>}]} {
    %c0_i32 = arith.constant 0 : i32
    %0 = arith.cmpi eq, %arg1, %c0_i32 : i32
    %1 = arith.extui %0 : i1 to i32
    %c0_i32_0 = arith.constant 0 : i32
    %2 = arith.cmpi ne, %1, %c0_i32_0 : i32
    scf.if %2 {
      %cst_21 = arith.constant 0.000000e+00 : f32
      %31 = vector.broadcast %cst_21 : f32 to vector<1x4x4xf32>
      %c0_22 = arith.constant 0 : index
      %c0_23 = arith.constant 0 : index
      %c0_24 = arith.constant 0 : index
      %32 = vector.load %arg4[%c0_22, %c0_23, %c0_24] : memref<1x4x4xf32, #tpu.memory_space<vmem>>, vector<1x4x4xf32>
      tpu.vector_store %arg4[%c0_22, %c0_23, %c0_24], %31 {strides = array<i32>} : memref<1x4x4xf32, #tpu.memory_space<vmem>>, vector<1x4x4xf32>,
      %cst_25 = arith.constant 0.000000e+00 : f32
      %33 = vector.broadcast %cst_25 : f32 to vector<1x4x1xf32>
      %c0_26 = arith.constant 0 : index
      %c0_27 = arith.constant 0 : index
      %c0_28 = arith.constant 0 : index
      %34 = vector.load %arg5[%c0_26, %c0_27, %c0_28] : memref<1x4x1xf32, #tpu.memory_space<vmem>>, vector<1x4x1xf32>
      tpu.vector_store %arg5[%c0_26, %c0_27, %c0_28], %33 {strides = array<i32>} : memref<1x4x1xf32, #tpu.memory_space<vmem>>, vector<1x4x1xf32>,
    } else {
    }
    %c0 = arith.constant 0 : index
    %c0_1 = arith.constant 0 : index
    %c0_2 = arith.constant 0 : index
    %3 = vector.load %arg3[%c0, %c0_1, %c0_2] : memref<1x4x256xf32, #tpu.memory_space<vmem>>, vector<1x4x256xf32>
    %4 = vector.shape_cast %3 : vector<1x4x256xf32> to vector<4x256xf32>
    %c0_3 = arith.constant 0 : index
    %c0_4 = arith.constant 0 : index
    %c0_5 = arith.constant 0 : index
    %5 = vector.load %arg2[%c0_3, %c0_4, %c0_5] : memref<1x4x256xf32, #tpu.memory_space<vmem>>, vector<1x4x256xf32>
    %6 = vector.shape_cast %5 : vector<1x4x256xf32> to vector<4x256xf32>
    %cst = arith.constant dense<0xFF800000> : vector<256xf32>
    %7 = vector.multi_reduction <maximumf>, %4, %cst [0] : vector<4x256xf32> to vector<256xf32>
    %8 = vector.shape_cast %7 : vector<256xf32> to vector<1x256xf32>
    %9 = vector.broadcast %8 : vector<1x256xf32> to vector<4x256xf32>
    %10 = arith.subf %4, %9 : vector<4x256xf32>
    %11 = math.exp %10 : vector<4x256xf32>
    %cst_6 = arith.constant dense<0.000000e+00> : vector<256xf32>
    %12 = vector.multi_reduction <add>, %11, %cst_6 [0] : vector<4x256xf32> to vector<256xf32>
    %13 = vector.shape_cast %12 : vector<256xf32> to vector<1x256xf32>
    %14 = vector.broadcast %13 : vector<1x256xf32> to vector<4x256xf32>
    %15 = arith.divf %11, %14 : vector<4x256xf32>
    %c0_7 = arith.constant 0 : index
    %c0_8 = arith.constant 0 : index
    %c0_9 = arith.constant 0 : index
    %16 = vector.load %arg4[%c0_7, %c0_8, %c0_9] : memref<1x4x4xf32, #tpu.memory_space<vmem>>, vector<1x4x4xf32>
    %17 = vector.shape_cast %16 : vector<1x4x4xf32> to vector<4x4xf32>
    %cst_10 = arith.constant dense<0.000000e+00> : vector<4x4xf32>
    %18 = tpu.matmul %6, %15, %cst_10 {dimension_numbers = #tpu.dot_dimension_numbers<[1], [1], [0], [0], [0, 0, 1, 0], [], []>, precision = #tpu.contract_precision<fp32>} : vector<4x256xf32>, vector<4x256xf32>, vector<4x4xf32> -> vector<4x4xf32>
    %19 = arith.addf %17, %18 : vector<4x4xf32>
    %c0_11 = arith.constant 0 : index
    %c0_12 = arith.constant 0 : index
    %c0_13 = arith.constant 0 : index
    %20 = vector.load %arg4[%c0_11, %c0_12, %c0_13] : memref<1x4x4xf32, #tpu.memory_space<vmem>>, vector<1x4x4xf32>
    %21 = vector.shape_cast %20 : vector<1x4x4xf32> to vector<4x4xf32>
    %22 = vector.shape_cast %19 : vector<4x4xf32> to vector<1x4x4xf32>
    tpu.vector_store %arg4[%c0_11, %c0_12, %c0_13], %22 {strides = array<i32>} : memref<1x4x4xf32, #tpu.memory_space<vmem>>, vector<1x4x4xf32>,
    %c0_14 = arith.constant 0 : index
    %c0_15 = arith.constant 0 : index
    %c0_16 = arith.constant 0 : index
    %23 = vector.load %arg5[%c0_14, %c0_15, %c0_16] : memref<1x4x1xf32, #tpu.memory_space<vmem>>, vector<1x4x1xf32>
    %24 = vector.shape_cast %23 : vector<1x4x1xf32> to vector<4x1xf32>
    %cst_17 = arith.constant dense<0.000000e+00> : vector<4xf32>
    %25 = vector.multi_reduction <add>, %15, %cst_17 [1] : vector<4x256xf32> to vector<4xf32>
    %26 = vector.shape_cast %25 : vector<4xf32> to vector<4x1xf32>
    %27 = arith.addf %24, %26 : vector<4x1xf32>
    %c0_18 = arith.constant 0 : index
    %c0_19 = arith.constant 0 : index
    %c0_20 = arith.constant 0 : index
    %28 = vector.load %arg5[%c0_18, %c0_19, %c0_20] : memref<1x4x1xf32, #tpu.memory_space<vmem>>, vector<1x4x1xf32>
    %29 = vector.shape_cast %28 : vector<1x4x1xf32> to vector<4x1xf32>
    %30 = vector.shape_cast %27 : vector<4x1xf32> to vector<1x4x1xf32>
    tpu.vector_store %arg5[%c0_18, %c0_19, %c0_20], %30 {strides = array<i32>} : memref<1x4x1xf32, #tpu.memory_space<vmem>>, vector<1x4x1xf32>,
    return
  }
  func.func @transform_0(%arg0: i32, %arg1: i32) -> (i32, i32, i32) {
    %c0_i32 = arith.constant 0 : i32
    %c0_i32_0 = arith.constant 0 : i32
    return %arg0, %c0_i32, %arg1 : i32, i32, i32
  }
  func.func @transform_1(%arg0: i32, %arg1: i32) -> (i32, i32, i32) {
    %c0_i32 = arith.constant 0 : i32
    %c0_i32_0 = arith.constant 0 : i32
    return %arg0, %c0_i32, %arg1 : i32, i32, i32
  }
  func.func @transform_2(%arg0: i32, %arg1: i32) -> (i32, i32, i32) {
    %c0_i32 = arith.constant 0 : i32
    %c0_i32_0 = arith.constant 0 : i32
    %c0_i32_1 = arith.constant 0 : i32
    return %arg0, %c0_i32, %c0_i32_0 : i32, i32, i32
  }
  func.func @transform_3(%arg0: i32, %arg1: i32) -> (i32, i32, i32) {
    %c0_i32 = arith.constant 0 : i32
    %c0_i32_0 = arith.constant 0 : i32
    %c0_i32_1 = arith.constant 0 : i32
    return %arg0, %c0_i32, %c0_i32_0 : i32, i32, i32
  }
}

</mosaic_0001>

<bundles_post_ra>
// kernel: tpu_custom_call.1
= control target key start
LH: loop header
LB: loop body
LE: loop exit
PB: predicated region body
PF: predicated region fallthrough
CT: control target
= control target key end

     0   :  { %9 = vsyncpa [#allocation3], 0  ;;  %s1232_s0 = inlined_call_operand.hbm [shape: f32[2,4,256], index: 0, kind: input, shape index: {}]   ;;  %s1233_s1 = inlined_call_operand.hbm [shape: f32[2,4,256], index: 1, kind: input, shape index: {}]   ;;  %s1234_s2 = inlined_call_operand.hbm [shape: f32[2,4,4], index: 2, kind: output, shape index: {0}]   ;;  %s1235_s3 = inlined_call_operand.vmem [shape: f32[2,4,1], index: 3, kind: output, shape index: {1}]  }
   0x1   :  { %11 = vsyncpa [#allocation3 + $0x1], 0 }
   0x2   :  { %12 = vsyncpa [#allocation6], 0 }
   0x3   :  { %14 = vsyncpa [#allocation6 + $0x1], 0 }
   0x4   :  { %15 = vsyncpa [#allocation4], 0 }
   0x5   :  { %17 = vsyncpa [#allocation4 + $0x1], 0  ;;  %s1079_s12 = smov 0   ;;  %s1081_s13 = smov 0  }
   0x6   :  { %s1083_s14 = smov 0   ;;  %s1085_s15 = smov 0  }
   0x7   :  { %s1087_s16 = smov 0   ;;  %s1089_s17 = smov 0  }
   0x8 LB: > { %s817_s18 = sadd.s32 4294967295, %s1056_s17   ;;  %s818_s19 = sadd.s32 4294967294, %s1056_s17   ;;  %s1056_s17 = sphi %s1089_s17, %s23_s17   ;;  %s1052_s16 = sphi %s1087_s16, %s1244_s16   ;;  %s1048_s15 = sphi %s1085_s15, %s1243_s15   ;;  %s1044_s14 = sphi %s1083_s14, %s1242_s14   ;;  %s1040_s13 = sphi %s1081_s13, %s1241_s13   ;;  %s1036_s12 = sphi %s1079_s12, %s1240_s12  }
   0x9   : > { %s35_s20 = sadd.s32 1, %s1052_s16  ;;  %s44_s21 = sadd.s32 1, %s1044_s14 }
   0xa   : > { %p37_p0 = scmp.ge.s32.totalorder %s35_s20, 2  ;;  %p51_p1 = scmp.ne.s32.totalorder %s1044_s14, %s1040_s13 }
   0xb   : > { %p52_p2 = scmp.eq.s32.totalorder %s1056_s17, 0  ;;  %p57_p3 = scmp.ne.s32.totalorder %s1040_s13, %s1036_s12 }
   0xc   : > { %s1246_s20 = smov (%p37_p0, %s35_s20), 0  ;;  %p58_p5 = scmp.eq.s32.totalorder %s817_s18, 0 }
   0xd   : > { %p1120_p4 = por %p52_p2, %p51_p1  ;;  %s39_s23 = ssub.s32 %s1052_s16, %s1246_s20 }
   0xe   : > { %p109_p6 = scmp.eq.s32.totalorder %s817_s18, 1  ;;  %p42_p7 = scmp.eq.s32.totalorder %s39_s23, 0 }
   0xf   : > { %p1126_p8 = por %p58_p5, %p57_p3  ;;  %p115_p10 = scmp.eq.s32.totalorder %s818_s19, 1 }
  0x10   : > { %p1130_p9 = por %p109_p6, %p51_p1  ;;  %p820_p12 = scmp.ge.s32.totalorder %s1056_s17, 2 }
  0x11   : > { %s1135_s26 = scalar_select %p42_p7, %s1044_s14, %s44_s21  }
  0x12   : > { %p1137_p11 = por %p115_p10, %p57_p3  ;;  %p855_p13 = scmp.lt.s32.totalorder %s1056_s17, 2 }
  0x13   : > { %s161_s28 = sand.u32 1, %s1044_s14   ;;  %s836_s30 = sshll.u32 %s1052_s16, 3 }
  0x14   : > { %s821_s29 = sshll.u32 %s161_s28, 3  ;;  %s172_s6 = scalar_lea.hbm %s1232_s0, %s836_s30 }
  0x15   : > { %s165_s7 = scalar_lea.vmem [#allocation2], %s821_s29  ;;  %s174_s9 = sshll.u32 %s172_s6, 4  ;;  %s175_s9 = int_to_ptr.hbm [resolvable:$true] %s174_s9 }
  0x16   : > { %s176_s8 = sshll.u32 %s165_s7, 4  ;;  %p845_p0 = pnand %p855_p13, %p1120_p4  ;;  %s177_s8 = int_to_ptr.vmem [resolvable:$true] %s176_s8 }
  0x17   : > { %p827_p1 = scmp.ge.s32.totalorder %s1056_s17, 1  ;;  %p203_p2 = scmp.lt.s32.totalorder %s1056_s17, 3 }
  0x18   : > { %s162_s10 = scalar_lea.sflag [#allocation3], %s161_s28  ;;  %s194_s19 = scalar_lea.hbm %s1233_s1, %s836_s30 }
  0x19   : > { %847 = dma.hbm_to_vmem [thread:$0]  (!%p845_p0), %s175_s9, 128, %s177_s8, %s162_s10  }
  0x1a   : > { %p204_p3 = pnand %p827_p1, %p203_p2  ;;  %s187_s21 = scalar_lea.vmem [#allocation5], %s821_s29 }
  0x1b   : > { %s198_s23 = sshll.u32 %s187_s21, 4  ;;  %s196_s4 = sshll.u32 %s194_s19, 4  ;;  %s199_s23 = int_to_ptr.vmem [resolvable:$true] %s198_s23  ;;  %s197_s4 = int_to_ptr.hbm [resolvable:$true] %s196_s4 }
  0x1c   : > { %s184_s5 = scalar_lea.sflag [#allocation6], %s161_s28  ;;  %207 = sbr.rel (%p204_p3) target bundleno = 289 (0x121), region = 28 }
  0x1d   : > { %850 = dma.hbm_to_vmem [thread:$0]  (!%p845_p0), %s197_s4, 128, %s199_s23, %s184_s5  }
  0x1e   : > { %s1156_s22 = sand.u32 (!%p204_p3), 1, %s1040_s13  }
  0x1f   : > { %s828_s6 = sshll.u32 (!%p204_p3), %s1156_s22, 3  ;;  %s210_s7 = scalar_lea.sflag (!%p204_p3), [#allocation3], %s1156_s22 }
  0x20   : > { %s1160_s8 = scalar_lea.vmem (!%p204_p3), [#allocation2], %s828_s6 }
  0x21   : > { %1023 = dma.done.wait (%p1126_p8), %s210_s7, 128  }
  0x22   : > { %1025 = vsyncadd (%p1126_p8), %s210_s7, 4294967168  ;;  %s220_s28 = scalar_lea.sflag [#allocation6], %s1156_s22  ;;  %s223_s29 = scalar_lea.vmem [#allocation5], %s828_s6 }
  0x23   : > { %1027 = dma.done.wait (%p1126_p8), %s220_s28, 128  }
  0x24   : > { %1029 = vsyncadd (%p1126_p8), %s220_s28, 4294967168  ;;  %v270_v0 = vld [vmem:[%s223_s29] sm:$0xff]  ;;  %vm278_vm0 = vcmask 1043456   ;;  %v271_v22 = vld [vmem:[%s1160_s8] sm:$0xff]  ;;  %p258_p4 = scmp.lt.s32.totalorder %s1048_s15, 1  ;;  %s830_s30 = sshll.u32 %s1156_s22, 2 }
  0x25   : > { %273 = vst [vmem:[#allocation1] ss:$2 sm:$0xff] %v270_v0  ;;  %vm266_vm5 = vcmask 27648   ;;  %s1186_s19 = scalar_lea.vmem [#allocation7], %s830_s30  ;;  %vm268_vm6 = vcmask 3072   ;;  %s833_s21 = sshll.u32 %s1048_s15, 2 }
  0x26   : > { %s259_s24 = scalar_select %p258_p4, %s1048_s15, 1 }
  0x27   : > { %s678_s5 = scalar_lea.hbm %s1234_s2, %s833_s21  ;;  %s680_s6 = sshll.u32 %s1186_s19, 4  ;;  %s681_s6 = int_to_ptr.vmem [resolvable:$true] %s680_s6 }
  0x28   : > { %s831_s9 = sshll.u32 %s259_s24, 2  ;;  %s682_s7 = sshll.u32 %s678_s5, 4  ;;  %s683_s7 = int_to_ptr.hbm [resolvable:$true] %s682_s7 }
  0x29   : > { %s261_s18 = scalar_lea.vmem %s1235_s3, %s831_s9  ;;  %s664_s15 = scalar_lea.sflag [#allocation4], %s1156_s22 }
  0x2a   : > { %s984_s8 = sshra.s32 %s683_s7, 4  ;;  %s990_s30 = scalar_lea.hbm %s1234_s2, 8  ;;  %s985_s8 = int_to_ptr.hbm [resolvable:$true] %s984_s8 }
  0x2b   : > { %s986_s28 = scalar_lea.hbm %s985_s8, 4  ;;  %p991_p8 = scmp.lt.s32.totalorder %s985_s8, %s1234_s2 }
  0x2c   : > { %v274_v1 = vld.sshfl [vmem:[#allocation1] sm:$0xff pattern:$0x75316420]  ;;  %v275_v2 = vld.sshfl [vmem:[#allocation1 + $0x8] sm:$0xff pattern:$0x75316420]  ;;  %p987_p5 = scmp.ne.s32.totalorder %s985_s8, %s986_s28  ;;  %p992_p10 = scmp.lt.s32.totalorder %s990_s30, %s986_s28 }
  0x2d   : > { %v279_v3 = vsel %vm278_vm0, %v274_v1, -inf  ;;  %v286_v4 = vsel %vm278_vm0, %v275_v2, -inf }
  0x2e   : > { %v280_v5 = vrot.slane %v279_v3, 4  ;;  %v287_v6 = vrot.slane %v286_v4, 4  ;;  %p988_p6 = pnand %p987_p5, %p1130_p9  ;;  %p993_p13 = por %p992_p10, %p991_p8 }
  0x30   : > { %v281_v7 = vmax.f32 %v279_v3, %v280_v5  ;;  %v288_v8 = vmax.f32 %v286_v4, %v287_v6  ;;  %p989_p7 = pneg %p988_p6 }
  0x32   : > { %v282_v9 = vrot.slane %v281_v7, 2  ;;  %v289_v10 = vrot.slane %v288_v8, 2  ;;  %p994_p0 = pnand %p993_p13, %p989_p7 }
  0x34   : > { %v283_v11 = vmax.f32 %v281_v7, %v282_v9  ;;  %v290_v12 = vmax.f32 %v288_v8, %v289_v10 }
  0x36   : > { %v284_v13 = vrot.slane %v283_v11, 1  ;;  %v291_v14 = vrot.slane %v290_v12, 1 }
  0x38   : > { %v285_v15 = vmax.f32 %v283_v11, %v284_v13  ;;  %v292_v16 = vmax.f32 %v290_v12, %v291_v14 }
  0x3a   : > { %v295_v17 = vrot.slane %v292_v16, 4 }
  0x3c   : > { %v296_v18 = vsel %vm278_vm0, %v285_v15, %v295_v17  ;;  %v1058_v17 = vmov 0.0  }
  0x3d   : > { %v298_v19 = vsub.f32 %v270_v0, %v296_v18  ;;  %267 = vst.msk [vmem:[%s1186_s19] sm:$0xf] %vm266_vm5, %v1058_v17 }
  0x3e   : > { %269 = vst.msk [vmem:[%s261_s18] sm:$0xf] %vm268_vm6, %v1058_v17 }
  0x3f   : > { %v299_v20 = vmul.f32 1.442695, %v298_v19 }
  0x41   : > { %906 = vpow2.f32 %v299_v20 }
  0x45   : > { %v649_v18 = vld [vmem:[%s261_s18] sm:$0xf] }
  0x47   : > { %v907_v21 = vpop.eup %906 }
  0x48   : > { %302 = vst [vmem:[#allocation1] ss:$2 sm:$0xff] %v907_v21 }
  0x4f   : > { %v303_v23 = vld.sshfl [vmem:[#allocation1] sm:$0xff pattern:$0x75316420]  ;;  %v304_v24 = vld.sshfl [vmem:[#allocation1 + $0x8] sm:$0xff pattern:$0x75316420] }
  0x50   : > { %v307_v25 = vsel %vm278_vm0, %v303_v23, 0.0  ;;  %v314_v26 = vsel %vm278_vm0, %v304_v24, 0.0  ;;  %343 = vst [vmem:[#allocation1] ss:$2 sm:$0xff] %v271_v22 }
  0x51   : > { %v308_v27 = vrot.slane %v307_v25, 4  ;;  %v315_v28 = vrot.slane %v314_v26, 4 }
  0x53   : > { %v309_v29 = vadd.f32 %v308_v27, %v307_v25  ;;  %v316_v30 = vadd.f32 %v315_v28, %v314_v26 }
  0x55   : > { %v310_v31 = vrot.slane %v309_v29, 2  ;;  %v317_v32 = vrot.slane %v316_v30, 2 }
  0x57   : > { %v311_v33 = vadd.f32 %v310_v31, %v309_v29  ;;  %v318_v34 = vadd.f32 %v317_v32, %v316_v30  ;;  %v344_v47 = vld.sshfl [vmem:[#allocation1] sm:$0xff pattern:$0x75316420]  ;;  %v345_v53 = vld.sshfl [vmem:[#allocation1 + $0x8] sm:$0xff pattern:$0x75316420] }
  0x58   : > { %v371_v49 = vand.u32 4294901760, %v344_v47  ;;  %v517_v57 = vand.u32 4294901760, %v345_v53 }
  0x59   : > { %v312_v35 = vrot.slane %v311_v33, 1  ;;  %v319_v36 = vrot.slane %v318_v34, 1 }
  0x5a   : > { %v372_v54 = vsub.f32 %v344_v47, %v371_v49  ;;  %v518_v61 = vsub.f32 %v345_v53, %v517_v57 }
  0x5b   : > { %v313_v37 = vadd.f32 %v312_v35, %v311_v33  ;;  %v320_v38 = vadd.f32 %v319_v36, %v318_v34 }
  0x5c   : > { %v373_v56 = vand.u32 4294901760, %v372_v54  ;;  %v519_v3 = vand.u32 4294901760, %v518_v61 }
  0x5d   : > { %v323_v39 = vrot.slane %v320_v38, 4 }
  0x5e   : > { %v374_v58 = vsub.f32 %v372_v54, %v373_v56  ;;  %v520_v8 = vsub.f32 %v518_v61, %v519_v3 }
  0x5f   : > { %v324_v40 = vsel %vm278_vm0, %v313_v37, %v323_v39 }
  0x60   : > { %908 = vrcp.f32 %v324_v40  ;;  %v337_v43 = vand.u32 2147483648, %v324_v40  ;;  %vm331_vm1 = vweird.f32 %v324_v40  ;;  %v335_v45 = vand.u32 2147483647, %v324_v40 }
  0x61   : > { %v375_v0 = vand.u32 4294901760, %v374_v58  ;;  %v521_v16 = vand.u32 4294901760, %v520_v8 }
  0x62   : > { %v338_v48 = vor.u32 1.1754944e-38, %v337_v43  ;;  %vm336_vm4 = vcmp.eq.f32.partialorder %v335_v45, 8.507059e+37  ;;  %v341_v43 = vld [vmem:[%s1186_s19] sm:$0xf] }
  0x66   : > { %v909_v41 = vpop.eup %908 }
  0x67   : > { %v327_v42 = vmul.f32 %v909_v41, %v324_v40  ;;  %vm332_vm2 = vweird.f32 %v909_v41 }
  0x68   : > { %vm333_vm3 = vmor %vm331_vm1, %vm332_vm2 }
  0x69   : > { %v328_v44 = vsub.f32 1.0, %v327_v42 }
  0x6b   : > { %v329_v46 = vmul.f32 %v909_v41, %v328_v44 }
  0x6d   : > { %v330_v50 = vadd.f32 %v909_v41, %v329_v46 }
  0x6f   : > { %v334_v51 = vsel %vm333_vm3, %v909_v41, %v330_v50 }
  0x70   : > { %v339_v52 = vsel %vm336_vm4, %v338_v48, %v334_v51 }
  0x71   : > { %v340_v55 = vmul.f32 %v907_v21, %v339_v52 }
  0x73   : > { %349 = vst [vmem:[#allocation1] ss:$2 sm:$0xff] %v340_v55 }
  0x7a   : > { %v350_v59 = vld.sshfl [vmem:[#allocation1] sm:$0xff pattern:$0x75316420]  ;;  %v351_v60 = vld.sshfl [vmem:[#allocation1 + $0x8] sm:$0xff pattern:$0x75316420] }
  0x7b   : > { %v369_v62 = vand.u32 4294901760, %v350_v59  ;;  %v515_v63 = vand.u32 4294901760, %v351_v60  ;;  %650 = vst [vmem:[#allocation1] ss:$2 sm:$0xff] %v340_v55 }
  0x7d   : > { %v396_v1 = vsub.f32 %v350_v59, %v369_v62  ;;  %370 = vmatpush.xpose.msra.mxu0 %v369_v62  ;;  %446 = vmatpush.xpose.msra.mxu3 %v369_v62  ;;  %v542_v2 = vsub.f32 %v351_v60, %v515_v63 }
  0x7f   : > { %423 = vmatpush.xpose.msra.mxu2 %v396_v1  ;;  %v397_v4 = vand.u32 4294901760, %v396_v1  ;;  %v543_v5 = vand.u32 4294901760, %v542_v2 }
  0x80   : > { %376 = vmatmul.f32.vlgmr.msra.gmra.mxu0 %v375_v0  ;;  %450 = vmatmul.f32.vlgmr.msra.gmra.mxu3 %v373_v56 }
  0x81   : > { %v398_v6 = vsub.f32 %v396_v1, %v397_v4  ;;  %472 = vmatpush.xpose.msrb.mxu0 %v397_v4  ;;  %v544_v7 = vsub.f32 %v542_v2, %v543_v5 }
  0x82   : > { %426 = vmatmul.f32.vlgmr.msra.gmra.mxu2 %v372_v54  ;;  %v651_v9 = vld.sshfl [vmem:[#allocation1] sm:$0xff pattern:$0x75316420]  ;;  %v652_v10 = vld.sshfl [vmem:[#allocation1 + $0x8] sm:$0xff pattern:$0x75316420] }
  0x83   : > { %516 = vmatpush.xpose.msrb.mxu2 %v515_v63  ;;  %v399_v11 = vand.u32 4294901760, %v398_v6  ;;  %v545_v12 = vand.u32 4294901760, %v544_v7  ;;  %v655_v13 = vsel %vm278_vm0, %v651_v9, 0.0  ;;  %v656_v14 = vsel %vm278_vm0, %v652_v10, 0.0 }
  0x84   : > { %v657_v15 = vadd.f32 %v656_v14, %v655_v13 }
  0x85   : > { %569 = vmatpush.xpose.msra.mxu0 %v542_v2  ;;  %400 = vmatpush.xpose.msra.mxu1 %v399_v11 }
  0x86   : > { %546 = vmatpush.xpose.msrb.mxu3 %v545_v12  ;;  %658 = vadd.xlane.f32.xlu0 %v657_v15 }
  0x87   : > { %618 = vmatpush.xpose.msra.mxu2 %v543_v5 }
  0x88   : > { %402 = vmatmul.f32.vlgmr.msra.gmra.mxu1 %v371_v49  ;;  %474 = vmatmul.f32.vlgmr.msrb.gmra.mxu0 %v371_v49 }
  0x89   : > { %494 = vmatpush.xpose.msrb.mxu1 %v369_v62  ;;  %548 = vmatmul.f32.vlgmr.msrb.gmra.mxu3 %v517_v57 }
  0x8a   : > { %640 = vmatpush.xpose.msra.mxu3 %v515_v63  ;;  %522 = vmatmul.f32.vlgmr.msrb.gmra.mxu2 %v521_v16 }
  0x8d   : > { %592 = vmatpush.xpose.msra.mxu1 %v515_v63 }
  0x90   : > { %496 = vmatmul.f32.vlgmr.msrb.gmra.mxu1 %v371_v49  ;;  %572 = vmatmul.f32.vlgmr.msra.gmra.mxu0 %v518_v61 }
  0x91   : > { %642 = vmatmul.f32.vlgmr.msra.gmra.mxu3 %v517_v57 }
  0x92   : > { %620 = vmatmul.f32.vlgmr.msra.gmra.mxu2 %v517_v57 }
  0x98   : > { %596 = vmatmul.f32.vlgmr.msra.gmra.mxu1 %v519_v3 }
  0xf9   : > { %v659_v19 = vpop.xlane.xlu0 %658 }
  0xfa   : > { %v660_v21 = vadd.f32 %v659_v19, %v649_v18 }
  0xfc   : > { %662 = vst.msk [vmem:[%s261_s18] sm:$0xf] %vm268_vm6, %v660_v21 }
  0xfd   : > { %v377_v20 = vpop.f32.mrf.mxu0 }
 0x103   : > { %v451_v22 = vpop.f32.mrf.mxu3 }
 0x105   : > { %v403_v23 = vpop.f32.mrf.mxu1  ;;  %v427_v24 = vpop.f32.mrf.mxu2 }
 0x106   : > { %v404_v25 = vadd.f32 %v403_v23, %v377_v20  ;;  %v475_v26 = vpop.f32.mrf.mxu0 }
 0x108   : > { %v428_v27 = vadd.f32 %v427_v24, %v404_v25 }
 0x10a   : > { %v452_v28 = vadd.f32 %v451_v22, %v428_v27 }
 0x10c   : > { %v476_v29 = vadd.f32 %v475_v26, %v452_v28  ;;  %v549_v30 = vpop.f32.mrf.mxu3 }
 0x10d   : > { %v497_v31 = vpop.f32.mrf.mxu1  ;;  %v523_v32 = vpop.f32.mrf.mxu2 }
 0x10e   : > { %v498_v33 = vadd.f32 %v497_v31, %v476_v29  ;;  %v573_v35 = vpop.f32.mrf.mxu0 }
 0x110   : > { %v524_v34 = vadd.f32 %v523_v32, %v498_v33 }
 0x112   : > { %v550_v36 = vadd.f32 %v549_v30, %v524_v34 }
 0x114   : > { %v574_v37 = vadd.f32 %v573_v35, %v550_v36  ;;  %v643_v41 = vpop.f32.mrf.mxu3 }
 0x115   : > { %v597_v38 = vpop.f32.mrf.mxu1  ;;  %v621_v39 = vpop.f32.mrf.mxu2 }
 0x116   : > { %v598_v40 = vadd.f32 %v597_v38, %v574_v37 }
 0x118   : > { %v622_v42 = vadd.f32 %v621_v39, %v598_v40 }
 0x11a   : > { %v644_v44 = vadd.f32 %v643_v41, %v622_v42 }
 0x11c   : > { %v646_v45 = vadd.f32 %v644_v44, %v341_v43 }
 0x11e   : > { %648 = vst.msk [vmem:[%s1186_s19] sm:$0xf] %vm266_vm5, %v646_v45 }
 0x11f   : > { %997 = shalt.err (!%p994_p0)
}
 0x120   : > { %842 = dma.vmem_to_hbm [thread:$0]  (%p1130_p9), %s681_s6, 64, %s683_s7, %s664_s15  }
 0x121 PF: > { %s697_s22 = sand.u32 1, %s1036_s12   ;;  %p852_p1 = pnand %p820_p12, %p1137_p11 }
 0x122   : > { %s698_s11 = scalar_lea.sflag [#allocation4], %s697_s22 }
 0x123   : > { %p853_p2 = pneg %p852_p1 }
 0x125   : > { %1031 = dma.done.wait (%p853_p2), %s698_s11, 64  }
 0x126   : > { %1033 = vsyncadd (%p853_p2), %s698_s11, 4294967232  ;;  %s23_s17 = sadd.s32 1, %s1056_s17   ;;  %s1240_s12 = smov %s1040_s13 }
 0x127   : > { %p20_p3 = scmp.ge.s32.totalorder %s23_s17, 4   ;;  %s1241_s13 = smov %s1044_s14 }
 0x128   : > { %s1242_s14 = smov %s1135_s26  ;;  %s1243_s15 = smov %s1052_s16 }
 0x129   : > { %s1244_s16 = smov %s1246_s20  ;;  %22 = sbr.rel (!%p20_p3) target bundleno = 8 (0x8), region = 102 }
 0x12e   :  { %711 = vsyncpa [#allocation3], 1 }
 0x12f   :  { %713 = vsyncpa [#allocation3 + $0x1], 1 }
 0x130   :  { %714 = vsyncpa [#allocation6], 1 }
 0x131   :  { %716 = vsyncpa [#allocation6 + $0x1], 1 }
 0x132   :  { %717 = vsyncpa [#allocation4], 1 }
 0x133   :  { %719 = vsyncpa [#allocation4 + $0x1], 1 }

</bundles_post_ra>
